<compile_context>
chip_gen: v7x
topology: tpu7x:2x2x1
jax: 0.10.0
libtpu: 0.0.40
codegen_flags: <defaults>
</compile_context>

<pallas_src>
import jax
import jax.numpy as jnp
from jax.experimental import pallas as pl
from jax.experimental.pallas import tpu as pltpu

LANE = 128      # TPU lane width; padded width of the two hidden layers inside the kernel
HIDDEN = 64     # logical hidden width of the QNetwork


def _round_up(x, m):
    return ((x + m - 1) // m) * m


def _qnetwork_kernel(x_ref, w1_ref, b1_ref, w2_ref, b2_ref, w3_ref, b3_ref, out_ref):
    """Fused fc1+ReLU -> fc2+ReLU -> fc3 on one batch tile.

    Weights arrive in their storage dtype (bf16 by default, f32 for exact parity);
    activations are cast to that dtype before each dot and accumulated in f32 on
    the MXU.  Padded hidden lanes of w1/b1/w2/b2 are zero, so they stay exactly
    zero through the ReLUs and contribute nothing to fc3.
    """
    w_dtype = w1_ref.dtype
    x = x_ref[...].astype(w_dtype)
    # fc1 + ReLU
    h1 = jnp.dot(x, w1_ref[...], preferred_element_type=jnp.float32) + b1_ref[...]
    h1 = jnp.maximum(h1, 0.0).astype(w_dtype)
    # fc2 + ReLU
    h2 = jnp.dot(h1, w2_ref[...], preferred_element_type=jnp.float32) + b2_ref[...]
    h2 = jnp.maximum(h2, 0.0).astype(w_dtype)
    # fc3 (no activation) -> narrow (tb, action_size) output block
    out = jnp.dot(h2, w3_ref[...], preferred_element_type=jnp.float32) + b3_ref[...]
    out_ref[...] = out.astype(out_ref.dtype)


def qnetwork_forward(state, padded_params, *, block_b=2048):
    """state: [B, state_size] f32.  padded_params: dict from pad_params().

    Returns [B, action_size] f32 Q-values (action_size comes from w3's unpadded
    column count, so no extra wrapper-side column slice / HBM pass).
    """
    w1, b1, w2, b2, w3, b3 = (
        padded_params["w1"], padded_params["b1"], padded_params["w2"],
        padded_params["b2"], padded_params["w3"], padded_params["b3"],
    )
    state = state.astype(jnp.float32)
    B, S = state.shape
    A = w3.shape[1]  # true action_size (narrow output)

    # Batch tiling: multiples of 8 sublanes.  block_b=2048 keeps per-step VMEM at a
    # few MiB (well under the 16/32 MiB scoped defaults on v5e/v6e/v7x) while
    # amortizing the ~0.35us/step grid overhead.
    block_b = max(8, _round_up(block_b, 8))
    tb = min(block_b, _round_up(B, 8))
    n_blocks = pl.cdiv(B, tb)
    # v7x has 2 TensorCores: ensure >= 2 grid steps whenever the batch can be split,
    # then rebalance the tile so the steps are even and pad waste is minimal.
    if n_blocks == 1 and B > 8:
        n_blocks = 2
    if n_blocks > 1:
        tb = min(block_b, _round_up(pl.cdiv(B, n_blocks), 8))
    n_blocks = pl.cdiv(B, tb)
    B_pad = n_blocks * tb
    if B_pad != B:
        # Padded rows pick up the biases (garbage Q-values); they are sliced off below,
        # so never reduce/argmax over the padded output directly.
        state = jnp.pad(state, ((0, B_pad - B), (0, 0)))

    flops = 2 * B_pad * (S * LANE + LANE * LANE + LANE * A)
    w_bytes = sum(int(w.size) * w.dtype.itemsize for w in (w1, w2, w3))
    b_bytes = sum(int(b.size) * b.dtype.itemsize for b in (b1, b2, b3))
    bytes_accessed = 4 * B_pad * S + w_bytes + b_bytes + 4 * B_pad * A

    out = pl.pallas_call(
        _qnetwork_kernel,
        out_shape=jax.ShapeDtypeStruct((B_pad, A), jnp.float32),
        grid=(n_blocks,),
        in_specs=[
            pl.BlockSpec((tb, S), lambda i: (i, 0)),       # activation tile (pipelined)
            # Constant index maps: weights/biases stay VMEM-resident across steps.
            # TODO(synk): pipeline_mode=pl.Buffered(1) on these constant inputs (and
            # Buffered(3) on the activation/output streams) once stable; skipped here
            # to keep the kernel compiling cleanly across releases.
            pl.BlockSpec((S, LANE), lambda i: (0, 0)),     # w1
            pl.BlockSpec((1, LANE), lambda i: (0, 0)),     # b1
            pl.BlockSpec((LANE, LANE), lambda i: (0, 0)),  # w2
            pl.BlockSpec((1, LANE), lambda i: (0, 0)),     # b2
            pl.BlockSpec((LANE, A), lambda i: (0, 0)),     # w3 (narrow columns)
            pl.BlockSpec((1, A), lambda i: (0, 0)),        # b3 (narrow)
        ],
        # Narrow (tb, action_size) output block: masked stores, but ~30x fewer output
        # bytes than a 128-lane padded slab on this memory-bound kernel.
        out_specs=pl.BlockSpec((tb, A), lambda i: (i, 0)),
        compiler_params=pltpu.CompilerParams(
            # TODO(synk): if "parallel" doesn't shard the grid across v7x's two
            # TensorCores, switch this axis to pltpu.CORE_PARALLEL.
            dimension_semantics=("parallel",),
            vmem_limit_bytes=32 * 1024 * 1024,
        ),
        cost_estimate=pl.CostEstimate(
            flops=flops, transcendentals=0, bytes_accessed=bytes_accessed),
    )(state, w1, b1, w2, b2, w3, b3)

    return out if B_pad == B else out[:B]


def init_params(key, state_size, action_size, hidden=HIDDEN):
    """Deterministic init mimicking PyTorch nn.Linear default (uniform +-1/sqrt(fan_in)).
    Weights stored as [in, out] (transposed vs. torch), bias as [1, out]."""
    def linear_init(k, fan_in, fan_out):
        kw, kb = jax.random.split(k)
        bound = 1.0 / jnp.sqrt(fan_in)
        w = jax.random.uniform(kw, (fan_in, fan_out), jnp.float32, -bound, bound)
        b = jax.random.uniform(kb, (1, fan_out), jnp.float32, -bound, bound)
        return w, b

    k1, k2, k3 = jax.random.split(key, 3)
    w1, b1 = linear_init(k1, state_size, hidden)
    w2, b2 = linear_init(k2, hidden, hidden)
    w3, b3 = linear_init(k3, hidden, action_size)
    return {"w1": w1, "b1": b1, "w2": w2, "b2": b2, "w3": w3, "b3": b3}


def pad_params(params, weight_dtype=jnp.bfloat16):
    """Zero-pad hidden feature dims up to LANE (128); fc3 columns stay at action_size
    so the kernel emits a narrow output.  Zero padding keeps the math exact because
    padded lanes contribute nothing.  Weights are stored in `weight_dtype` (bf16 by
    default for single-pass MXU; pass jnp.float32 for exact parity); biases stay f32."""
    def pad_to(a, rows, cols, dtype):
        r, c = a.shape
        return jnp.pad(a, ((0, rows - r), (0, cols - c))).astype(dtype)

    S = params["w1"].shape[0]
    A = params["w3"].shape[1]
    return {
        "w1": pad_to(params["w1"], S, LANE, weight_dtype),
        "b1": pad_to(params["b1"], 1, LANE, jnp.float32),
        "w2": pad_to(params["w2"], LANE, LANE, weight_dtype),
        "b2": pad_to(params["b2"], 1, LANE, jnp.float32),
        "w3": pad_to(params["w3"], LANE, A, weight_dtype),   # rows padded only
        "b3": params["b3"].astype(jnp.float32),              # stays (1, action_size)
    }


def qnetwork_ref(state, params):
    """Pure-JAX f32 reference (unpadded) matching the PyTorch forward."""
    h1 = jnp.maximum(state @ params["w1"] + params["b1"], 0.0)
    h2 = jnp.maximum(h1 @ params["w2"] + params["b2"], 0.0)
    return h2 @ params["w3"] + params["b3"]


if __name__ == "__main__":
    key = jax.random.PRNGKey(0)
    k_params, k_state = jax.random.split(key)

    state_size = 8
    action_size = 4
    batch = 8

    params = init_params(k_params, state_size, action_size)
    state = jax.random.normal(k_state, (batch, state_size), jnp.float32)
    ref = qnetwork_ref(state, params)

    # Fast path: bf16 weights / bf16 dot inputs, f32 accumulation (~1e-2 rel error).
    out_bf16 = qnetwork_forward(state, pad_params(params))
    out_bf16 = jax.block_until_ready(out_bf16)
    assert out_bf16.shape == (batch, action_size)
    assert jnp.allclose(out_bf16, ref, atol=3e-2, rtol=3e-2), "bf16 path mismatch"

    # Exact path: f32 weights (matches the PyTorch forward numerics; default MXU
    # precision may still use bf16 passes, hence the 1e-4 tolerance).
    out_f32 = qnetwork_forward(state, pad_params(params, weight_dtype=jnp.float32))
    out_f32 = jax.block_until_ready(out_f32)
    assert out_f32.shape == (batch, action_size)
    assert jnp.allclose(out_f32, ref, atol=1e-4, rtol=1e-4), "f32 path mismatch"

    print("KERNEL_OK")
</pallas_src>

<mosaic_0001>
module attributes {stable_mosaic.version = 11 : i64} {
  func.func @_qnetwork_kernel(%arg0: i32, %arg1: memref<8x8xf32, #tpu.memory_space<vmem>>, %arg2: memref<8x128xbf16, #tpu.memory_space<vmem>>, %arg3: memref<1x128xf32, #tpu.memory_space<vmem>>, %arg4: memref<128x128xbf16, #tpu.memory_space<vmem>>, %arg5: memref<1x128xf32, #tpu.memory_space<vmem>>, %arg6: memref<128x4xbf16, #tpu.memory_space<vmem>>, %arg7: memref<1x4xf32, #tpu.memory_space<vmem>>, %arg8: memref<8x4xf32, #tpu.memory_space<vmem>>) attributes {dimension_semantics = [#tpu.dimension_semantics<parallel>], iteration_bounds = array<i64: 1>, scalar_prefetch = 0 : i64, scratch_operands = 0 : i64, tpu.core_type = #tpu.core_type<tc>, window_params = [{transform_indices = @transform_0, window_bounds = array<i64: 8, 8>}, {pipeline_mode = #tpu.pipeline_mode<synchronous>, transform_indices = @transform_1, window_bounds = array<i64: 8, 128>}, {pipeline_mode = #tpu.pipeline_mode<synchronous>, transform_indices = @transform_2, window_bounds = array<i64: 1, 128>}, {pipeline_mode = #tpu.pipeline_mode<synchronous>, transform_indices = @transform_3, window_bounds = array<i64: 128, 128>}, {pipeline_mode = #tpu.pipeline_mode<synchronous>, transform_indices = @transform_4, window_bounds = array<i64: 1, 128>}, {pipeline_mode = #tpu.pipeline_mode<synchronous>, transform_indices = @transform_5, window_bounds = array<i64: 128, 4>}, {pipeline_mode = #tpu.pipeline_mode<synchronous>, transform_indices = @transform_6, window_bounds = array<i64: 1, 4>}, {transform_indices = @transform_7, window_bounds = array<i64: 8, 4>}]} {
    %c0 = arith.constant 0 : index
    %c0_0 = arith.constant 0 : index
    %0 = vector.load %arg1[%c0, %c0_0] : memref<8x8xf32, #tpu.memory_space<vmem>>, vector<8x8xf32>
    %1 = arith.truncf %0 : vector<8x8xf32> to vector<8x8xbf16>
    %c0_1 = arith.constant 0 : index
    %c0_2 = arith.constant 0 : index
    %2 = vector.load %arg2[%c0_1, %c0_2] : memref<8x128xbf16, #tpu.memory_space<vmem>>, vector<8x128xbf16>
    %cst = arith.constant dense<0.000000e+00> : vector<8x128xf32>
    %3 = tpu.matmul %1, %2, %cst {dimension_numbers = #tpu.dot_dimension_numbers<[1], [0], [0], [1], [0, 0, 1, 1], [], []>} : vector<8x8xbf16>, vector<8x128xbf16>, vector<8x128xf32> -> vector<8x128xf32>
    %c0_3 = arith.constant 0 : index
    %c0_4 = arith.constant 0 : index
    %4 = vector.load %arg3[%c0_3, %c0_4] : memref<1x128xf32, #tpu.memory_space<vmem>>, vector<1x128xf32>
    %5 = vector.broadcast %4 : vector<1x128xf32> to vector<8x128xf32>
    %6 = arith.addf %3, %5 : vector<8x128xf32>
    %cst_5 = arith.constant 0.000000e+00 : f32
    %7 = vector.broadcast %cst_5 : f32 to vector<8x128xf32>
    %8 = arith.maximumf %6, %7 : vector<8x128xf32>
    %9 = arith.truncf %8 : vector<8x128xf32> to vector<8x128xbf16>
    %c0_6 = arith.constant 0 : index
    %c0_7 = arith.constant 0 : index
    %10 = vector.load %arg4[%c0_6, %c0_7] : memref<128x128xbf16, #tpu.memory_space<vmem>>, vector<128x128xbf16>
    %cst_8 = arith.constant dense<0.000000e+00> : vector<8x128xf32>
    %11 = tpu.matmul %9, %10, %cst_8 {dimension_numbers = #tpu.dot_dimension_numbers<[1], [0], [0], [1], [0, 0, 1, 1], [], []>} : vector<8x128xbf16>, vector<128x128xbf16>, vector<8x128xf32> -> vector<8x128xf32>
    %c0_9 = arith.constant 0 : index
    %c0_10 = arith.constant 0 : index
    %12 = vector.load %arg5[%c0_9, %c0_10] : memref<1x128xf32, #tpu.memory_space<vmem>>, vector<1x128xf32>
    %13 = vector.broadcast %12 : vector<1x128xf32> to vector<8x128xf32>
    %14 = arith.addf %11, %13 : vector<8x128xf32>
    %cst_11 = arith.constant 0.000000e+00 : f32
    %15 = vector.broadcast %cst_11 : f32 to vector<8x128xf32>
    %16 = arith.maximumf %14, %15 : vector<8x128xf32>
    %17 = arith.truncf %16 : vector<8x128xf32> to vector<8x128xbf16>
    %c0_12 = arith.constant 0 : index
    %c0_13 = arith.constant 0 : index
    %18 = vector.load %arg6[%c0_12, %c0_13] : memref<128x4xbf16, #tpu.memory_space<vmem>>, vector<128x4xbf16>
    %cst_14 = arith.constant dense<0.000000e+00> : vector<8x4xf32>
    %19 = tpu.matmul %17, %18, %cst_14 {dimension_numbers = #tpu.dot_dimension_numbers<[1], [0], [0], [1], [0, 0, 1, 1], [], []>} : vector<8x128xbf16>, vector<128x4xbf16>, vector<8x4xf32> -> vector<8x4xf32>
    %c0_15 = arith.constant 0 : index
    %c0_16 = arith.constant 0 : index
    %20 = vector.load %arg7[%c0_15, %c0_16] : memref<1x4xf32, #tpu.memory_space<vmem>>, vector<1x4xf32>
    %21 = vector.broadcast %20 : vector<1x4xf32> to vector<8x4xf32>
    %22 = arith.addf %19, %21 : vector<8x4xf32>
    %c0_17 = arith.constant 0 : index
    %c0_18 = arith.constant 0 : index
    %23 = vector.load %arg8[%c0_17, %c0_18] : memref<8x4xf32, #tpu.memory_space<vmem>>, vector<8x4xf32>
    tpu.vector_store %arg8[%c0_17, %c0_18], %22 {strides = array<i32>} : memref<8x4xf32, #tpu.memory_space<vmem>>, vector<8x4xf32>,
    return
  }
  func.func @transform_0(%arg0: i32) -> (i32, i32) {
    %c0_i32 = arith.constant 0 : i32
    %c0_i32_0 = arith.constant 0 : i32
    return %arg0, %c0_i32 : i32, i32
  }
  func.func @transform_1(%arg0: i32) -> (i32, i32) {
    %c0_i32 = arith.constant 0 : i32
    %c0_i32_0 = arith.constant 0 : i32
    %c0_i32_1 = arith.constant 0 : i32
    return %c0_i32, %c0_i32_0 : i32, i32
  }
  func.func @transform_2(%arg0: i32) -> (i32, i32) {
    %c0_i32 = arith.constant 0 : i32
    %c0_i32_0 = arith.constant 0 : i32
    %c0_i32_1 = arith.constant 0 : i32
    return %c0_i32, %c0_i32_0 : i32, i32
  }
  func.func @transform_3(%arg0: i32) -> (i32, i32) {
    %c0_i32 = arith.constant 0 : i32
    %c0_i32_0 = arith.constant 0 : i32
    %c0_i32_1 = arith.constant 0 : i32
    return %c0_i32, %c0_i32_0 : i32, i32
  }
  func.func @transform_4(%arg0: i32) -> (i32, i32) {
    %c0_i32 = arith.constant 0 : i32
    %c0_i32_0 = arith.constant 0 : i32
    %c0_i32_1 = arith.constant 0 : i32
    return %c0_i32, %c0_i32_0 : i32, i32
  }
  func.func @transform_5(%arg0: i32) -> (i32, i32) {
    %c0_i32 = arith.constant 0 : i32
    %c0_i32_0 = arith.constant 0 : i32
    %c0_i32_1 = arith.constant 0 : i32
    return %c0_i32, %c0_i32_0 : i32, i32
  }
  func.func @transform_6(%arg0: i32) -> (i32, i32) {
    %c0_i32 = arith.constant 0 : i32
    %c0_i32_0 = arith.constant 0 : i32
    %c0_i32_1 = arith.constant 0 : i32
    return %c0_i32, %c0_i32_0 : i32, i32
  }
  func.func @transform_7(%arg0: i32) -> (i32, i32) {
    %c0_i32 = arith.constant 0 : i32
    %c0_i32_0 = arith.constant 0 : i32
    return %arg0, %c0_i32 : i32, i32
  }
}

</mosaic_0001>

<bundles_post_ra>
// kernel: tpu_custom_call.1
= control target key start
LH: loop header
LB: loop body
LE: loop exit
PB: predicated region body
PF: predicated region fallthrough
CT: control target
= control target key end

     0   :  { %vm41_vm0 = vcmask 1043456   ;;  %v421_v0 = vmov 0.0   ;;  %vm422_vm1 = vmmov 0   ;;  %vm37_vm2 = vcmask 64512   ;;  %s552_s1 = inlined_call_operand.vmem [shape: bf16[8,128], index: 1, kind: input, shape index: {}]   ;;  %s553_s0 = inlined_call_operand.vmem [shape: f32[8,8], index: 0, kind: input, shape index: {}]   ;;  %s554_s3 = inlined_call_operand.vmem [shape: bf16[128,128], index: 3, kind: input, shape index: {}]   ;;  %s555_s5 = inlined_call_operand.vmem [shape: bf16[128,4], index: 5, kind: input, shape index: {}]   ;;  %s556_s2 = inlined_call_operand.vmem [shape: f32[1,128], index: 2, kind: input, shape index: {}]   ;;  %s557_s4 = inlined_call_operand.vmem [shape: f32[1,128], index: 4, kind: input, shape index: {}]   ;;  %s558_s6 = inlined_call_operand.vmem [shape: f32[1,4], index: 6, kind: input, shape index: {}]   ;;  %s559_s7 = inlined_call_operand.vmem [shape: f32[8,4], index: 7, kind: output, shape index: {}]  }
   0x1   :  { %357 = vmatprep.subr.bf16.mxu0 %v421_v0  ;;  %v29_v1 = vld [vmem:[%s552_s1] sm:$0xf]  ;;  %359 = vmatprep.mubr.msk.bf16.mxu0 %vm422_vm1, %v421_v0  ;;  %v406_v6 = vld [vmem:[%s554_s3 + $0x8] sm:$0xff]   ;;  %v407_v7 = vld [vmem:[%s554_s3 + $0x10] sm:$0xff]   ;;  %vm311_vm3 = vcmask 31744  }
   0x2   :  { %v27_v2 = vld [vmem:[%s553_s0] sm:$0xff]  ;;  %v43_v3 = vsel %vm41_vm0, %v29_v1, 0  ;;  %363 = vmatprep.subr.bf16.mxu1 %v421_v0  ;;  %379 = vmatprep.mubr.msk.bf16.mxu1 %vm422_vm1, %v421_v0  ;;  %v408_v8 = vld [vmem:[%s554_s3 + $0x18] sm:$0xff]   ;;  %v410_v10 = vld [vmem:[%s554_s3 + $0x28] sm:$0xff]  }
   0x3   :  { %v28_v4 = vpack.c.bf16 %v27_v2, %v27_v2  ;;  %v405_v5 = vld [vmem:[%s554_s3] sm:$0xff]   ;;  %358 = vmatpush3.bf16.msra.mxu0 %v43_v3  ;;  %v411_v11 = vld [vmem:[%s554_s3 + $0x30] sm:$0xff]   ;;  %v412_v12 = vld [vmem:[%s554_s3 + $0x38] sm:$0xff]  }
   0x4   :  { %364 = vmatpush3.bf16.msra.mxu1 %v405_v5  ;;  %383 = vmatprep.subr.bf16.mxu0 %v421_v0  ;;  %v409_v9 = vld [vmem:[%s554_s3 + $0x20] sm:$0xff]   ;;  %v414_v14 = vld [vmem:[%s555_s5 + $0x8] sm:$0xff]   ;;  %v415_v15 = vld [vmem:[%s555_s5 + $0x10] sm:$0xff]  }
   0x5   :  { %365 = vmatprep.subr.bf16.mxu1 %v421_v0  ;;  %v413_v13 = vld [vmem:[%s555_s5] sm:$0xff]   ;;  %v416_v16 = vld [vmem:[%s555_s5 + $0x18] sm:$0xff]   ;;  %v418_v18 = vld [vmem:[%s555_s5 + $0x28] sm:$0xff]  }
   0x6   :  { %360 = vmatmul.mubr.msk.bf16.vlgmr.msra.gmra.mrb[0].mxu0 %vm37_vm2, %v28_v4  ;;  %v417_v17 = vld [vmem:[%s555_s5 + $0x20] sm:$0xff]   ;;  %v419_v27 = vld [vmem:[%s555_s5 + $0x30] sm:$0xff]   ;;  %v420_v28 = vld [vmem:[%s555_s5 + $0x38] sm:$0xff]  }
   0x7   :  { %399 = vmatprep.mubr.msk.bf16.mxu0 %vm422_vm1, %v421_v0  ;;  %384 = vmatpush3.bf16.msra.mxu0 %v413_v13  ;;  %v317_v19 = vld [vmem:[%s556_s2] ss:$0 sm:$0xff] }
   0x8   :  { %366 = vmatpush3.bf16.msra.mxu1 %v406_v6  ;;  %385 = vmatprep.subr.bf16.mxu0 %v421_v0  ;;  %v319_v29 = vld [vmem:[%s557_s4] ss:$0 sm:$0xff] }
   0x9   :  { %367 = vmatprep.subr.bf16.mxu1 %v421_v0  ;;  %v328_v37 = vld [vmem:[%s558_s6] ss:$0 sm:$0xff] }
   0xb   :  { %386 = vmatpush3.bf16.msra.mxu0 %v414_v14 }
   0xc   :  { %368 = vmatpush3.bf16.msra.mxu1 %v407_v7  ;;  %387 = vmatprep.subr.bf16.mxu0 %v421_v0 }
   0xd   :  { %369 = vmatprep.subr.bf16.mxu1 %v421_v0 }
   0xf   :  { %388 = vmatpush3.bf16.msra.mxu0 %v415_v15 }
  0x10   :  { %370 = vmatpush3.bf16.msra.mxu1 %v408_v8  ;;  %389 = vmatprep.subr.bf16.mxu0 %v421_v0 }
  0x11   :  { %371 = vmatprep.subr.bf16.mxu1 %v421_v0 }
  0x13   :  { %390 = vmatpush3.bf16.msra.mxu0 %v416_v16 }
  0x14   :  { %372 = vmatpush3.bf16.msra.mxu1 %v409_v9  ;;  %391 = vmatprep.subr.bf16.mxu0 %v421_v0 }
  0x15   :  { %373 = vmatprep.subr.bf16.mxu1 %v421_v0 }
  0x17   :  { %392 = vmatpush3.bf16.msra.mxu0 %v417_v17 }
  0x18   :  { %374 = vmatpush3.bf16.msra.mxu1 %v410_v10  ;;  %393 = vmatprep.subr.bf16.mxu0 %v421_v0 }
  0x19   :  { %375 = vmatprep.subr.bf16.mxu1 %v421_v0 }
  0x1b   :  { %394 = vmatpush3.bf16.msra.mxu0 %v418_v18 }
  0x1c   :  { %376 = vmatpush3.bf16.msra.mxu1 %v411_v11  ;;  %395 = vmatprep.subr.bf16.mxu0 %v421_v0 }
  0x1d   :  { %377 = vmatprep.subr.bf16.mxu1 %v421_v0 }
  0x1f   :  { %396 = vmatpush3.bf16.msra.mxu0 %v419_v27 }
  0x20   :  { %378 = vmatpush3.bf16.msra.mxu1 %v412_v12  ;;  %397 = vmatprep.subr.bf16.mxu0 %v421_v0 }
  0x23   :  { %398 = vmatpush3.bf16.msra.mxu0 %v420_v28 }
  0xd9   :  { %v79_v20 = vpop.f32.mrb[0].mxu0 }
  0xda   :  { %v80_v21 = vadd.f32 %v317_v19, %v79_v20  ;;  %v361_v22 = vpop.f32.mrb[1].mxu0 }
  0xdb   :  { %v82_v23 = vpop.f32.mrb[2].mxu0 }
  0xdc   :  { %v85_v24 = vmax.f32 %v80_v21, 0.0  ;;  %v362_v25 = vpop.f32.mrb[3].mxu0 }
  0xde   :  { %v86_v26 = vpack.c.bf16 %v85_v24, %v85_v24 }
  0xe0   :  { %380 = vmatmul.mubr.bf16.vlgmr.msra.gmra.mrb[0].mxu1 %v86_v26 }
 0x1b3   :  { %v192_v30 = vpop.f32.mrb[0].mxu1 }
 0x1b4   :  { %v193_v31 = vadd.f32 %v319_v29, %v192_v30  ;;  %v381_v32 = vpop.f32.mrb[1].mxu1 }
 0x1b5   :  { %v195_v33 = vpop.f32.mrb[2].mxu1 }
 0x1b6   :  { %v198_v34 = vmax.f32 %v193_v31, 0.0  ;;  %v382_v35 = vpop.f32.mrb[3].mxu1 }
 0x1b8   :  { %v199_v36 = vpack.c.bf16 %v198_v34, %v198_v34 }
 0x1ba   :  { %400 = vmatmul.mubr.bf16.vlgmr.msra.gmra.mrb[4].mxu0 %v199_v36 }
 0x28d   :  { %v305_v38 = vpop.f32.mrb[4].mxu0 }
 0x28e   :  { %v306_v39 = vadd.f32 %v328_v37, %v305_v38  ;;  %v401_v40 = vpop.f32.mrb[5].mxu0 }
 0x28f   :  { %v308_v41 = vpop.f32.mrb[6].mxu0 }
 0x290   :  { %312 = vst.msk [vmem:[%s559_s7] sm:$0xff] %vm311_vm3, %v306_v39  ;;  %v402_v42 = vpop.f32.mrb[7].mxu0 }

</bundles_post_ra>
